<compile_context>
chip_gen: v7x
topology: tpu7x:2x2x1
jax: 0.10.0
libtpu: 0.0.40
codegen_flags: <defaults>
</compile_context>

<pallas_src>
import jax
import jax.numpy as jnp
from jax.experimental import pallas as pl
from jax.experimental.pallas import tpu as pltpu


_LANE = 128                               # lane width (last-dim tiling unit)
_SUBLANE = 8                              # sublane width (2nd-to-last unit)
_VMEM_TILING_BUDGET = 44 * 1024 * 1024    # conservative for v7x's 64 MiB VMEM
_VMEM_LIMIT_BYTES = 56 * 1024 * 1024      # raise 16/32 MiB default scoped limit


def _round_up(x, m):
    return ((x + m - 1) // m) * m


def _make_cosine_kernel(matmul_dtype):
    def kernel(q_ref, s_ref, o_ref):
        # q_ref: (1, tile_rows, c_pad)   float32, rows = merged (q, i) positions
        # s_ref: (1, c_pad,    sM_pad)   matmul_dtype, already L2-normalized
        # o_ref: (1, tile_rows, sM_pad)
        qf = q_ref[0].astype(jnp.float32)
        # Match the reference exactly: x / (1e-16 + ||x||_2) along channels.
        norm = jnp.sqrt(jnp.sum(qf * qf, axis=1, keepdims=True))
        qn = (qf / (norm + 1e-16)).astype(matmul_dtype)
        # [tile_rows, c_pad] @ [c_pad, sM_pad] on the MXU, f32 accumulation.
        o_ref[0] = jnp.dot(qn, s_ref[0],
                           preferred_element_type=jnp.float32).astype(o_ref.dtype)
    return kernel


def _choose_tile_rows(qM, c_pad, sM_pad, mm_bytes, out_bytes, max_tile_rows):
    """Largest row tile (multiple of 8) whose double-buffered footprint fits VMEM."""
    tile = max(_SUBLANE,
               min(_round_up(max_tile_rows, _SUBLANE), _round_up(qM, _SUBLANE)))

    def vmem_bytes(t):
        return (2 * t * c_pad * 4                  # query tile (f32), double-buffered
                + 2 * c_pad * sM_pad * mm_bytes    # support slab, double-buffered
                + 2 * t * sM_pad * out_bytes)      # output tile, double-buffered

    while tile > _SUBLANE and vmem_bytes(tile) > _VMEM_TILING_BUDGET:
        tile = _round_up(tile // 2, _SUBLANE)
    return tile


def similarity_cosine(support_xf, query_xf, *, max_tile_rows=1024,
                      use_bf16_matmul=True, out_dtype=jnp.float32,
                      transpose_output=True):
    """Cosine-similarity head (Similarity(metric='cosine')) as a Pallas TPU kernel.

    support_xf: [b, s, c, M_s]; query_xf: [b, q, c, h, w] or [b, q, c, M_q].
    Returns [b, q, s, M_q, M_s] (transpose_output=True, module contract) or
    [b, q, M_q, s, M_s] (transpose_output=False, no extra HBM pass).
    """
    if query_xf.ndim == 5:
        b, q, c, h, w = query_xf.shape
        query_xf = query_xf.reshape(b, q, c, h * w)
    b, q, c, M_q = query_xf.shape
    _, s, _, M_s = support_xf.shape
    qM = q * M_q
    sM = s * M_s

    matmul_dtype = jnp.bfloat16 if use_bf16_matmul else jnp.float32
    mm_bytes = jnp.dtype(matmul_dtype).itemsize
    out_bytes = jnp.dtype(out_dtype).itemsize

    # Pad the contraction axis (MXU K dim / query lane dim) and the merged
    # support columns (output lane dim) to lane multiples: unmasked loads and
    # lane-dense, unmasked output stores.  Zero padding is semantically inert.
    c_pad = _round_up(c, _LANE)
    sM_pad = _round_up(sM, _LANE)

    # ---- Layout plumbing in the wrapper; the kernel does no transposes. ----
    # Query -> [b, q*M_q, c_pad]: rows = merged (q, i) positions, channels last.
    q2d = jnp.transpose(query_xf, (0, 1, 3, 2)).reshape(b, qM, c).astype(jnp.float32)
    if c_pad != c:
        q2d = jnp.pad(q2d, ((0, 0), (0, 0), (0, c_pad - c)))

    # Support -> [b, c_pad, s*M_s padded], L2-normalized HERE (tiny XLA op).
    # Doing it in the wrapper removes the in-kernel once-per-batch init and its
    # scratch, so the row-tile grid axis can be 'parallel' (v7x 2-TC sharding
    # even when b == 1), and lets the slab stream as bf16 (half the HBM reads).
    s2d = jnp.transpose(support_xf, (0, 2, 1, 3)).reshape(b, c, sM).astype(jnp.float32)
    s2d = s2d / (1e-16 + jnp.sqrt(jnp.sum(s2d * s2d, axis=1, keepdims=True)))
    s2d = jnp.pad(s2d.astype(matmul_dtype),
                  ((0, 0), (0, c_pad - c), (0, sM_pad - sM)))

    # Row tiling from an explicit VMEM budget (v7x has only 64 MiB VMEM).
    tile_rows = _choose_tile_rows(qM, c_pad, sM_pad, mm_bytes, out_bytes,
                                  max_tile_rows)
    rows_padded = _round_up(qM, tile_rows)
    num_tiles = rows_padded // tile_rows
    if rows_padded != qM:
        # Zero rows normalize to 0 and are sliced off after the call.
        q2d = jnp.pad(q2d, ((0, 0), (0, rows_padded - qM), (0, 0)))

    # Note: for support slabs so large that even tile_rows == 8 exceeds the
    # budget, one would add 'arbitrary' grid axes over c (f32 accumulator) and/or
    # sM; not needed for typical few-shot feature-map sizes.

    kernel = _make_cosine_kernel(matmul_dtype)

    out2d = pl.pallas_call(
        kernel,
        out_shape=jax.ShapeDtypeStruct((b, rows_padded, sM_pad), out_dtype),
        grid_spec=pltpu.PrefetchScalarGridSpec(
            num_scalar_prefetch=0,
            grid=(b, num_tiles),
            in_specs=[
                pl.BlockSpec((1, tile_rows, c_pad), lambda ib, it: (ib, it, 0)),
                # Block index depends only on b -> the support slab stays
                # VMEM-resident across the whole row-tile axis (no re-DMA).
                pl.BlockSpec((1, c_pad, sM_pad), lambda ib, it: (ib, 0, 0)),
            ],
            out_specs=pl.BlockSpec((1, tile_rows, sM_pad),
                                   lambda ib, it: (ib, it, 0)),
        ),
        compiler_params=pltpu.CompilerParams(
            # No cross-step state (support normalized in the wrapper), so both
            # grid axes are safe to shard across cores.
            dimension_semantics=("parallel", "parallel"),
            vmem_limit_bytes=_VMEM_LIMIT_BYTES,
        ),
    )(q2d, s2d)

    out2d = out2d[:, :qM, :sM]
    out5d = out2d.reshape(b, q, M_q, s, M_s)          # free reshape
    if transpose_output:
        # Module contract layout [b, q, s, M_q, M_s].  This is a full extra
        # read+write of the largest tensor; callers that can consume
        # [b, q, M_q, s, M_s] should pass transpose_output=False.
        return jnp.transpose(out5d, (0, 1, 3, 2, 4))
    return out5d


def _similarity_cosine_ref(support_xf, query_xf):
    """Pure-JAX reference mirroring the PyTorch module (metric='cosine')."""
    if query_xf.ndim == 5:
        b, q, c, h, w = query_xf.shape
        query_xf = query_xf.reshape(b, q, c, h * w)

    def l2norm(x, axis):
        return x / (1e-16 + jnp.linalg.norm(x, ord=2, axis=axis, keepdims=True))

    sup = l2norm(support_xf, axis=-2)    # [b, s, c, M_s]
    qry = l2norm(query_xf, axis=-2)      # [b, q, c, M_q]
    # out[b,q,s,i,j] = sum_c qry[b,q,c,i] * sup[b,s,c,j]
    return jnp.einsum("bqci,bscj->bqsij", qry, sup)


if __name__ == "__main__":
    key = jax.random.PRNGKey(0)
    k1, k2 = jax.random.split(key)

    b, s, q, c, h, w = 2, 2, 3, 32, 4, 4
    M_s = h * w
    support_xf = jax.random.normal(k1, (b, s, c, M_s), dtype=jnp.float32)
    query_xf = jax.random.normal(k2, (b, q, c, h, w), dtype=jnp.float32)

    ref = _similarity_cosine_ref(support_xf, query_xf)

    # Default path: bf16 MXU operands, f32 accumulation (v6e/v7x fast path).
    out = similarity_cosine(support_xf, query_xf)
    out = jax.block_until_ready(out)
    assert out.shape == (b, q, s, h * w, M_s), out.shape
    assert jnp.allclose(out, ref, atol=2e-2, rtol=2e-2), "bf16 path mismatch"

    # Full-f32 path for tight numerics.
    out_f32 = similarity_cosine(support_xf, query_xf, use_bf16_matmul=False)
    out_f32 = jax.block_until_ready(out_f32)
    assert jnp.allclose(out_f32, ref, atol=1e-5, rtol=1e-5), "f32 path mismatch"

    # Transpose-free output layout [b, q, M_q, s, M_s].
    out_alt = similarity_cosine(support_xf, query_xf, use_bf16_matmul=False,
                                transpose_output=False)
    out_alt = jax.block_until_ready(out_alt)
    assert jnp.allclose(out_alt, jnp.transpose(ref, (0, 1, 3, 2, 4)),
                        atol=1e-5, rtol=1e-5), "alt-layout mismatch"

    print("KERNEL_OK")
</pallas_src>

<mosaic_0001>
module attributes {stable_mosaic.version = 11 : i64} {
  func.func @kernel(%arg0: i32, %arg1: i32, %arg2: memref<1x48x128xf32, #tpu.memory_space<vmem>>, %arg3: memref<1x128x128xbf16, #tpu.memory_space<vmem>>, %arg4: memref<1x48x128xf32, #tpu.memory_space<vmem>>) attributes {dimension_semantics = [#tpu.dimension_semantics<parallel>, #tpu.dimension_semantics<parallel>], iteration_bounds = array<i64: 2, 1>, scalar_prefetch = 0 : i64, scratch_operands = 0 : i64, tpu.core_type = #tpu.core_type<tc>, window_params = [{transform_indices = @transform_0, window_bounds = array<i64: 1, 48, 128>}, {transform_indices = @transform_1, window_bounds = array<i64: 1, 128, 128>}, {transform_indices = @transform_2, window_bounds = array<i64: 1, 48, 128>}]} {
    %c0 = arith.constant 0 : index
    %c0_0 = arith.constant 0 : index
    %c0_1 = arith.constant 0 : index
    %0 = vector.load %arg2[%c0, %c0_0, %c0_1] : memref<1x48x128xf32, #tpu.memory_space<vmem>>, vector<1x48x128xf32>
    %1 = vector.shape_cast %0 : vector<1x48x128xf32> to vector<48x128xf32>
    %2 = arith.mulf %1, %1 : vector<48x128xf32>
    %cst = arith.constant dense<0.000000e+00> : vector<48xf32>
    %3 = vector.multi_reduction <add>, %2, %cst [1] : vector<48x128xf32> to vector<48xf32>
    %4 = vector.shape_cast %3 : vector<48xf32> to vector<48x1xf32>
    %5 = math.sqrt %4 : vector<48x1xf32>
    %cst_2 = arith.constant 1.000000e-16 : f32
    %6 = vector.broadcast %cst_2 : f32 to vector<48x1xf32>
    %7 = arith.addf %5, %6 : vector<48x1xf32>
    %8 = vector.broadcast %7 : vector<48x1xf32> to vector<48x128xf32>
    %9 = arith.divf %1, %8 : vector<48x128xf32>
    %10 = arith.truncf %9 : vector<48x128xf32> to vector<48x128xbf16>
    %c0_3 = arith.constant 0 : index
    %c0_4 = arith.constant 0 : index
    %c0_5 = arith.constant 0 : index
    %11 = vector.load %arg3[%c0_3, %c0_4, %c0_5] : memref<1x128x128xbf16, #tpu.memory_space<vmem>>, vector<1x128x128xbf16>
    %12 = vector.shape_cast %11 : vector<1x128x128xbf16> to vector<128x128xbf16>
    %cst_6 = arith.constant dense<0.000000e+00> : vector<48x128xf32>
    %13 = tpu.matmul %10, %12, %cst_6 {dimension_numbers = #tpu.dot_dimension_numbers<[1], [0], [0], [1], [0, 0, 1, 1], [], []>} : vector<48x128xbf16>, vector<128x128xbf16>, vector<48x128xf32> -> vector<48x128xf32>
    %c0_7 = arith.constant 0 : index
    %c0_8 = arith.constant 0 : index
    %c0_9 = arith.constant 0 : index
    %14 = vector.load %arg4[%c0_7, %c0_8, %c0_9] : memref<1x48x128xf32, #tpu.memory_space<vmem>>, vector<1x48x128xf32>
    %15 = vector.shape_cast %14 : vector<1x48x128xf32> to vector<48x128xf32>
    %16 = vector.shape_cast %13 : vector<48x128xf32> to vector<1x48x128xf32>
    tpu.vector_store %arg4[%c0_7, %c0_8, %c0_9], %16 {strides = array<i32>} : memref<1x48x128xf32, #tpu.memory_space<vmem>>, vector<1x48x128xf32>,
    return
  }
  func.func @transform_0(%arg0: i32, %arg1: i32) -> (i32, i32, i32) {
    %c0_i32 = arith.constant 0 : i32
    %c0_i32_0 = arith.constant 0 : i32
    return %arg0, %arg1, %c0_i32 : i32, i32, i32
  }
  func.func @transform_1(%arg0: i32, %arg1: i32) -> (i32, i32, i32) {
    %c0_i32 = arith.constant 0 : i32
    %c0_i32_0 = arith.constant 0 : i32
    %c0_i32_1 = arith.constant 0 : i32
    return %arg0, %c0_i32, %c0_i32_0 : i32, i32, i32
  }
  func.func @transform_2(%arg0: i32, %arg1: i32) -> (i32, i32, i32) {
    %c0_i32 = arith.constant 0 : i32
    %c0_i32_0 = arith.constant 0 : i32
    return %arg0, %arg1, %c0_i32 : i32, i32, i32
  }
}

</mosaic_0001>

<bundles_post_ra>
// kernel: tpu_custom_call.1
= control target key start
LH: loop header
LB: loop body
LE: loop exit
PB: predicated region body
PF: predicated region fallthrough
CT: control target
= control target key end

     0   :  { %7 = vsyncpa [#allocation3], 0  ;;  %s1216_s0 = inlined_call_operand.hbm [shape: f32[2,48,128], index: 0, kind: input, shape index: {}]   ;;  %s1217_s1 = inlined_call_operand.hbm [shape: bf16[2,128,128], index: 1, kind: input, shape index: {}]   ;;  %s1218_s2 = inlined_call_operand.hbm [shape: f32[2,48,128], index: 2, kind: output, shape index: {}]  }
   0x1   :  { %9 = vsyncpa [#allocation3 + $0x1], 0 }
   0x2   :  { %10 = vsyncpa [#allocation6], 0 }
   0x3   :  { %12 = vsyncpa [#allocation6 + $0x1], 0 }
   0x4   :  { %13 = vsyncpa [#allocation4], 0 }
   0x5   :  { %15 = vsyncpa [#allocation4 + $0x1], 0  ;;  %s925_s9 = smov 0   ;;  %s927_s10 = smov 0  }
   0x6   :  { %s929_s11 = smov 0   ;;  %s931_s12 = smov 0  }
   0x7   :  { %s933_s13 = smov 0   ;;  %s935_s14 = smov 0  }
   0x8 LB: > { %s563_s15 = sadd.s32 4294967295, %s897_s14   ;;  %s564_s16 = sadd.s32 4294967294, %s897_s14   ;;  %s897_s14 = sphi %s935_s14, %s21_s14   ;;  %s893_s13 = sphi %s933_s13, %s1236_s13   ;;  %s889_s12 = sphi %s931_s12, %s1235_s12   ;;  %s885_s11 = sphi %s929_s11, %s1234_s11   ;;  %s881_s10 = sphi %s927_s10, %s1233_s10   ;;  %s877_s9 = sphi %s925_s9, %s1232_s9  }
   0x9   : > { %s33_s17 = sadd.s32 1, %s893_s13  ;;  %s42_s18 = sadd.s32 1, %s885_s11 }
   0xa   : > { %p35_p0 = scmp.ge.s32.totalorder %s33_s17, 2  ;;  %p49_p1 = scmp.ne.s32.totalorder %s885_s11, %s881_s10 }
   0xb   : > { %p50_p2 = scmp.eq.s32.totalorder %s897_s14, 0  ;;  %p55_p3 = scmp.ne.s32.totalorder %s881_s10, %s877_s9 }
   0xc   : > { %s1238_s17 = smov (%p35_p0, %s33_s17), 0  ;;  %p56_p5 = scmp.eq.s32.totalorder %s563_s15, 0 }
   0xd   : > { %p966_p4 = por %p50_p2, %p49_p1  ;;  %s37_s20 = ssub.s32 %s893_s13, %s1238_s17 }
   0xe   : > { %p107_p6 = scmp.eq.s32.totalorder %s563_s15, 1  ;;  %p40_p7 = scmp.eq.s32.totalorder %s37_s20, 0 }
   0xf   : > { %p972_p8 = por %p56_p5, %p55_p3  ;;  %p113_p10 = scmp.eq.s32.totalorder %s564_s16, 1 }
  0x10   : > { %p976_p9 = por %p107_p6, %p49_p1  ;;  %p661_p13 = scmp.lt.s32.totalorder %s897_s14, 2 }
  0x11   : > { %s1222_s21 = scalar_select %p972_p8, 1, 0 }
  0x12   : > { %s1223_s22 = scalar_select %p976_p9, 1, 0 }
  0x13   : > { %s981_s23 = scalar_select %p40_p7, %s885_s11, %s42_s18  }
  0x14   : > { %p983_p11 = por %p113_p10, %p55_p3  ;;  %s990_s25 = sand.u32 1, %s885_s11  }
  0x15   : > { %s640_s26 = smul.u32 48, %s990_s25  ;;  %p996_p0 = pnand %p661_p13, %p966_p4 }
  0x16   : > { %s1224_s24 = scalar_select %p983_p11, 1, 0 }
  0x17   : > { %s641_s27 = smul.u32 768, %s893_s13  ;;  %s137_s4 = scalar_lea.vmem [#allocation2], %s640_s26 }
  0x18   : > { %s146_s5 = sshll.u32 %s137_s4, 4  ;;  %s134_s6 = scalar_lea.sflag [#allocation3], %s990_s25  ;;  %s1005_s5 = int_to_ptr.vmem [resolvable:$true] %s146_s5 }
  0x19   : > { %s1003_s3 = scalar_lea.hbm %s1216_s0, %s641_s27  ;;  %p753_p3 = pneg %p996_p0 }
  0x1a   : > { %s751_s7 = scalar_lea.hbm %s1003_s3, 768  ;;  %s756_s16 = scalar_lea.hbm %s1216_s0, 1536 }
  0x1b   : > { %p752_p2 = scmp.ne.s32.totalorder %s1003_s3, %s751_s7  ;;  %p757_p6 = scmp.lt.u32.totalorder %s1003_s3, %s1216_s0 }
  0x1c   : > { %p758_p7 = scmp.lt.u32.totalorder %s756_s16, %s751_s7  ;;  %p760_p13 = scmp.lt.u32.totalorder %s751_s7, %s1003_s3 }
  0x1d   : > { %p754_p4 = pnand %p753_p3, %p752_p2 }
  0x1e   : > { %p759_p10 = por %p758_p7, %p757_p6 }
  0x1f   : > { %p755_p5 = pneg %p754_p4 }
  0x20   : > { %p761_p12 = por %p760_p13, %p759_p10 }
  0x22   : > { %p762_p1 = pnand %p761_p12, %p755_p5 }
  0x24   : > { %765 = shalt.err (!%p762_p1)
}
  0x25   : > { %s766_s20 = scalar_lea.vmem %s1005_s5, 768  ;;  %s899_s26 = smov [#allocation2]  }
  0x26   : > { %p767_p2 = scmp.ne.s32.totalorder %s1005_s5, %s766_s20  ;;  %s771_s27 = sshll.u32 %s899_s26, 4  ;;  %s772_s27 = int_to_ptr.vmem [resolvable:$false] %s771_s27 }
  0x27   : > { %s773_s29 = scalar_lea.vmem %s772_s27, 1536  ;;  %p774_p9 = scmp.lt.s32.totalorder %s1005_s5, %s772_s27 }
  0x28   : > { %p769_p4 = pnand %p767_p2, %p753_p3  ;;  %p775_p6 = scmp.lt.s32.totalorder %s773_s29, %s766_s20 }
  0x2a   : > { %p770_p11 = pneg %p769_p4  ;;  %p776_p7 = por %p775_p6, %p774_p9 }
  0x2c   : > { %p777_p10 = pnand %p776_p7, %p770_p11 }
  0x2e   : > { %780 = shalt.err (!%p777_p10)
}
  0x2f   : > { %s900_s30 = smov 128   ;;  %s901_s4 = smov 8  }
  0x30   : > { %653 = dma.hbm_to_vmem [thread:$0]  (!%p996_p0), %s1003_s3, 768, %s1005_s5, %s134_s6, %s900_s30, %s900_s30, %s901_s4  }
  0x31   : > { %p175_p12 = scmp.lt.s32.totalorder %s897_s14, 3  ;;  %s568_s7 = sshll.u32 %s990_s25, 6 }
  0x32   : > { %s584_s8 = sshll.u32 %s893_s13, 10  ;;  %p1226_p9 = scmp.ge.s32.totalorder %s897_s14, 1 }
  0x33   : > { %s1048_s19 = scalar_lea.hbm %s1217_s1, %s584_s8  ;;  %s160_s20 = scalar_lea.vmem [#allocation5], %s568_s7 }
  0x34   : > { %p1041_p11 = pnand %p1226_p9, %p175_p12  ;;  %s167_s26 = sshll.u32 %s160_s20, 4  ;;  %s1050_s26 = int_to_ptr.vmem [resolvable:$true] %s167_s26 }
  0x35   : > { %s157_s3 = scalar_lea.sflag [#allocation6], %s990_s25  ;;  %s781_s5 = scalar_lea.hbm %s1048_s19, 1024 }
  0x36   : > { %p782_p1 = scmp.ne.s32.totalorder %s1048_s19, %s781_s5  ;;  %s786_s29 = scalar_lea.hbm %s1217_s1, 2048 }
  0x37   : > { %p787_p2 = scmp.lt.u32.totalorder %s1048_s19, %s1217_s1  ;;  %p788_p4 = scmp.lt.u32.totalorder %s786_s29, %s781_s5 }
  0x38   : > { %p784_p5 = pnand %p782_p1, %p753_p3  ;;  %p790_p7 = scmp.lt.u32.totalorder %s781_s5, %s1048_s19 }
  0x39   : > { %p789_p6 = por %p788_p4, %p787_p2 }
  0x3a   : > { %p785_p13 = pneg %p784_p5 }
  0x3b   : > { %p791_p10 = por %p790_p7, %p789_p6 }
  0x3d   : > { %p792_p12 = pnand %p791_p10, %p785_p13 }
  0x3f   : > { %795 = shalt.err (!%p792_p12)
}
  0x40   : > { %s796_s7 = scalar_lea.vmem %s1050_s26, 1024  ;;  %s902_s8 = smov [#allocation5]  }
  0x41   : > { %p797_p9 = scmp.ne.s32.totalorder %s1050_s26, %s796_s7  ;;  %s801_s16 = sshll.u32 %s902_s8, 4  ;;  %s802_s16 = int_to_ptr.vmem [resolvable:$false] %s801_s16 }
  0x42   : > { %s803_s18 = scalar_lea.vmem %s802_s16, 2048  ;;  %p804_p8 = scmp.lt.s32.totalorder %s1050_s26, %s802_s16 }
  0x43   : > { %p799_p1 = pnand %p797_p9, %p753_p3  ;;  %p805_p2 = scmp.lt.s32.totalorder %s803_s18, %s796_s7 }
  0x45   : > { %p800_p5 = pneg %p799_p1  ;;  %p806_p4 = por %p805_p2, %p804_p8 }
  0x47   : > { %p807_p6 = pnand %p806_p4, %p800_p5 }
  0x49   : > { %810 = shalt.err (!%p807_p6)
}
  0x4a   : > { %s903_s20 = smov 64   ;;  %s904_s5 = smov 4  }
  0x4b   : > { %656 = dma.hbm_to_vmem [thread:$0]  (!%p996_p0), %s1048_s19, 1024, %s1050_s26, %s157_s3, %s903_s20, %s903_s20, %s904_s5  }
  0x4c   : > { %179 = sbr.rel (%p1041_p11) target bundleno = 505 (0x1f9), region = 28  ;;  %s1081_s6 = sand.u32 (!%p1041_p11), 1, %s881_s10  }
  0x4d   : > { %s642_s27 = smul.u32 (!%p1041_p11), 48, %s1081_s6  ;;  %s182_s29 = scalar_lea.sflag (!%p1041_p11), [#allocation3], %s1081_s6 }
  0x4e   : > { %p1228_p8 = scmp.ne.s32.totalorder (!%p1041_p11), %s1222_s21, 0 }
  0x4f   : > { %s185_s30 = scalar_lea.vmem (!%p1041_p11), [#allocation2], %s642_s27 }
  0x53   : > { %864 = dma.done.wait (%p1228_p8), %s182_s29, 768  }
  0x54   : > { %866 = vsyncadd (%p1228_p8), %s182_s29, 4294966528  ;;  %s572_s25 = sshll.u32 %s1081_s6, 6  ;;  %s191_s28 = scalar_lea.sflag [#allocation6], %s1081_s6 }
  0x55   : > { %s1093_s15 = scalar_lea.vmem [#allocation5], %s572_s25 }
  0x56   : > { %868 = dma.done.wait (%p1228_p8), %s191_s28, 1024  }
  0x57   : > { %870 = vsyncadd (%p1228_p8), %s191_s28, 4294966272  ;;  %v1099_v0 = vld [vmem:[%s185_s30 + $0x10] sm:$0xff]  ;;  %v1101_v1 = vld [vmem:[%s185_s30] sm:$0xff]  ;;  %v905_v13 = vmov 0.0   ;;  %vm906_vm0 = vmmov 0   ;;  %s219_s21 = scalar_lea.vmem [#allocation7], %s642_s27 }
  0x58   : > { %v1103_v2 = vld [vmem:[%s185_s30 + $0x18] sm:$0xff]  ;;  %v231_v3 = vmul.f32 %v1099_v0, %v1099_v0  ;;  %v229_v4 = vmul.f32 %v1101_v1, %v1101_v1  ;;  %v1109_v5 = vld [vmem:[%s185_s30 + $0x8] sm:$0xff]  ;;  %v1111_v6 = vld [vmem:[%s185_s30 + $0x20] sm:$0xff]  ;;  %596 = vmatprep.subr.bf16.mxu0 %v905_v13  ;;  %624 = vmatprep.subr.bf16.mxu1 %v905_v13  ;;  %s453_s19 = sshll.u32 %s219_s21, 4  ;;  %s643_s26 = smul.u32 768, %s889_s12  ;;  %s1162_s19 = int_to_ptr.vmem [resolvable:$true] %s453_s19 }
  0x59   : > { %v1113_v7 = vld [vmem:[%s185_s30 + $0x28] sm:$0xff]  ;;  %v232_v8 = vmul.f32 %v1103_v2, %v1103_v2  ;;  %v230_v9 = vmul.f32 %v1109_v5, %v1109_v5  ;;  %v233_v10 = vmul.f32 %v1111_v6, %v1111_v6  ;;  %v719_v12 = vld [vmem:[%s1093_s15] sm:$0xff]   ;;  %v721_v15 = vld [vmem:[%s1093_s15 + $0x10] sm:$0xff]   ;;  %612 = vmatprep.mubr.msk.bf16.mxu0 %vm906_vm0, %v905_v13  ;;  %616 = vmatprep.mubr.msk.bf16.mxu1 %vm906_vm0, %v905_v13  ;;  %s438_s8 = scalar_lea.sflag [#allocation4], %s1081_s6  ;;  %s811_s16 = scalar_lea.vmem %s1162_s19, 768 }
  0x5a   : > { %239 = vadd.xlane.f32.xlu0 %v231_v3  ;;  %235 = vadd.xlane.f32.xlu1 %v229_v4  ;;  %v234_v11 = vmul.f32 %v1113_v7, %v1113_v7  ;;  %v720_v14 = vld [vmem:[%s1093_s15 + $0x8] sm:$0xff]   ;;  %v722_v16 = vld [vmem:[%s1093_s15 + $0x18] sm:$0xff]   ;;  %v723_v17 = vld [vmem:[%s1093_s15 + $0x20] sm:$0xff]   ;;  %s1167_s7 = scalar_lea.hbm %s1218_s2, %s643_s26  ;;  %p812_p0 = scmp.ne.s32.totalorder %s1162_s19, %s811_s16 }
  0x5b   : > { %597 = vmatpush3.bf16.msra.mxu0 %v719_v12  ;;  %632 = vmatpush3.bf16.msra.mxu1 %v719_v12  ;;  %v724_v18 = vld [vmem:[%s1093_s15 + $0x28] sm:$0xff]   ;;  %v725_v19 = vld [vmem:[%s1093_s15 + $0x30] sm:$0xff]   ;;  %v726_v20 = vld [vmem:[%s1093_s15 + $0x38] sm:$0xff]   ;;  %p1229_p3 = scmp.ne.s32.totalorder %s1223_s22, 0  ;;  %s907_s12 = smov [#allocation7]  }
  0x5c   : > { %598 = vmatprep.subr.bf16.mxu0 %v905_v13  ;;  %625 = vmatprep.subr.bf16.mxu1 %v905_v13  ;;  %s815_s18 = sshll.u32 %s907_s12, 4  ;;  %s816_s18 = int_to_ptr.vmem [resolvable:$false] %s815_s18 }
  0x5d   : > { %p813_p11 = pnand %p812_p0, %p1229_p3  ;;  %s817_s20 = scalar_lea.vmem %s816_s18, 1536 }
  0x5e   : > { %241 = vadd.xlane.f32.xlu0 %v232_v8  ;;  %237 = vadd.xlane.f32.xlu1 %v230_v9  ;;  %p818_p7 = scmp.lt.s32.totalorder %s1162_s19, %s816_s18  ;;  %p819_p10 = scmp.lt.s32.totalorder %s817_s20, %s811_s16 }
  0x5f   : > { %599 = vmatpush3.bf16.msra.mxu0 %v720_v14  ;;  %633 = vmatpush3.bf16.msra.mxu1 %v720_v14  ;;  %p814_p13 = pneg %p813_p11 }
  0x60   : > { %600 = vmatprep.subr.bf16.mxu0 %v905_v13  ;;  %626 = vmatprep.subr.bf16.mxu1 %v905_v13  ;;  %p820_p12 = por %p819_p10, %p818_p7 }
  0x62   : > { %243 = vadd.xlane.f32.xlu0 %v233_v10  ;;  %245 = vadd.xlane.f32.xlu1 %v234_v11  ;;  %p821_p9 = pnand %p820_p12, %p814_p13 }
  0x63   : > { %601 = vmatpush3.bf16.msra.mxu0 %v721_v15  ;;  %634 = vmatpush3.bf16.msra.mxu1 %v721_v15 }
  0x64   : > { %602 = vmatprep.subr.bf16.mxu0 %v905_v13  ;;  %627 = vmatprep.subr.bf16.mxu1 %v905_v13 }
  0x67   : > { %603 = vmatpush3.bf16.msra.mxu0 %v722_v16  ;;  %635 = vmatpush3.bf16.msra.mxu1 %v722_v16 }
  0x68   : > { %604 = vmatprep.subr.bf16.mxu0 %v905_v13  ;;  %628 = vmatprep.subr.bf16.mxu1 %v905_v13 }
  0x6b   : > { %605 = vmatpush3.bf16.msra.mxu0 %v723_v17  ;;  %636 = vmatpush3.bf16.msra.mxu1 %v723_v17 }
  0x6c   : > { %606 = vmatprep.subr.bf16.mxu0 %v905_v13  ;;  %629 = vmatprep.subr.bf16.mxu1 %v905_v13 }
  0x6f   : > { %607 = vmatpush3.bf16.msra.mxu0 %v724_v18  ;;  %637 = vmatpush3.bf16.msra.mxu1 %v724_v18 }
  0x70   : > { %608 = vmatprep.subr.bf16.mxu0 %v905_v13  ;;  %630 = vmatprep.subr.bf16.mxu1 %v905_v13 }
  0x73   : > { %609 = vmatpush3.bf16.msra.mxu0 %v725_v19  ;;  %638 = vmatpush3.bf16.msra.mxu1 %v725_v19 }
  0x74   : > { %610 = vmatprep.subr.bf16.mxu0 %v905_v13  ;;  %631 = vmatprep.subr.bf16.mxu1 %v905_v13 }
  0x77   : > { %611 = vmatpush3.bf16.msra.mxu0 %v726_v20  ;;  %639 = vmatpush3.bf16.msra.mxu1 %v726_v20 }
  0xe7   : > { %v240_v21 = vpop.xlane.xlu0 %239  ;;  %v236_v22 = vpop.xlane.xlu1 %235 }
  0xe8   : > { %727 = vrsqrt.f32 %v240_v21  ;;  %vm263_vm1 = vcmp.eq.f32.partialorder %v240_v21, inf  ;;  %v266_v30 = vand.u32 2147483648, %v240_v21  ;;  %vm265_vm2 = vcmp.eq.f32.partialorder %v240_v21, 0.0 }
  0xe9   : > { %729 = vrsqrt.f32 %v236_v22  ;;  %vm249_vm3 = vcmp.eq.f32.partialorder %v236_v22, inf  ;;  %v252_v33 = vand.u32 2147483648, %v236_v22  ;;  %vm251_vm4 = vcmp.eq.f32.partialorder %v236_v22, 0.0 }
  0xeb   : > { %v242_v23 = vpop.xlane.xlu0 %241  ;;  %v238_v24 = vpop.xlane.xlu1 %237 }
  0xec   : > { %731 = vrsqrt.f32 %v242_v23  ;;  %vm270_vm5 = vcmp.eq.f32.partialorder %v242_v23, inf  ;;  %vm272_vm6 = vcmp.eq.f32.partialorder %v242_v23, 0.0  ;;  %v273_v42 = vand.u32 2147483648, %v242_v23 }
  0xed   : > { %733 = vrsqrt.f32 %v238_v24  ;;  %vm256_vm7 = vcmp.eq.f32.partialorder %v238_v24, inf  ;;  %vm258_vm8 = vcmp.eq.f32.partialorder %v238_v24, 0.0  ;;  %v259_v45 = vand.u32 2147483648, %v238_v24 }
  0xef   : > { %v244_v25 = vpop.xlane.xlu0 %243  ;;  %v246_v26 = vpop.xlane.xlu1 %245 }
  0xf0   : > { %735 = vrsqrt.f32 %v244_v25  ;;  %vm277_vm9 = vcmp.eq.f32.partialorder %v244_v25, inf  ;;  %vm279_vm10 = vcmp.eq.f32.partialorder %v244_v25, 0.0  ;;  %v280_v54 = vand.u32 2147483648, %v244_v25 }
  0xf1   : > { %737 = vrsqrt.f32 %v246_v26  ;;  %vm284_vm11 = vcmp.eq.f32.partialorder %v246_v26, inf  ;;  %v287_v57 = vand.u32 2147483648, %v246_v26  ;;  %vm286_vm12 = vcmp.eq.f32.partialorder %v246_v26, 0.0 }
  0xf2   : > { %v728_v27 = vpop.eup %727 }
  0xf3   : > { %v730_v28 = vpop.eup %729  ;;  %v262_v29 = vmul.f32 %v728_v27, %v240_v21 }
  0xf4   : > { %v248_v31 = vmul.f32 %v730_v28, %v236_v22 }
  0xf5   : > { %v264_v32 = vsel %vm263_vm1, %v240_v21, %v262_v29 }
  0xf6   : > { %v732_v34 = vpop.eup %731  ;;  %v267_v35 = vsel %vm265_vm2, %v266_v30, %v264_v32  ;;  %v250_v36 = vsel %vm249_vm3, %v236_v22, %v248_v31 }
  0xf7   : > { %v734_v37 = vpop.eup %733  ;;  %v291_v38 = vadd.f32 1e-16, %v267_v35  ;;  %v253_v39 = vsel %vm251_vm4, %v252_v33, %v250_v36  ;;  %v269_v40 = vmul.f32 %v732_v34, %v242_v23 }
  0xf8   : > { %v289_v41 = vadd.f32 1e-16, %v253_v39  ;;  %v255_v43 = vmul.f32 %v734_v37, %v238_v24 }
  0xf9   : > { %v271_v44 = vsel %vm270_vm5, %v242_v23, %v269_v40  ;;  %739 = vrcp.f32 %v291_v38 }
  0xfa   : > { %v736_v46 = vpop.eup %735  ;;  %v274_v47 = vsel %vm272_vm6, %v273_v42, %v271_v44  ;;  %v257_v48 = vsel %vm256_vm7, %v238_v24, %v255_v43  ;;  %741 = vrcp.f32 %v289_v41 }
  0xfb   : > { %v738_v49 = vpop.eup %737  ;;  %v292_v50 = vadd.f32 1e-16, %v274_v47  ;;  %v260_v51 = vsel %vm258_vm8, %v259_v45, %v257_v48  ;;  %v276_v52 = vmul.f32 %v736_v46, %v244_v25 }
  0xfc   : > { %v290_v53 = vadd.f32 1e-16, %v260_v51  ;;  %v283_v55 = vmul.f32 %v738_v49, %v246_v26 }
  0xfd   : > { %743 = vrcp.f32 %v292_v50  ;;  %v278_v56 = vsel %vm277_vm9, %v244_v25, %v276_v52 }
  0xfe   : > { %745 = vrcp.f32 %v290_v53  ;;  %v281_v58 = vsel %vm279_vm10, %v280_v54, %v278_v56  ;;  %v285_v59 = vsel %vm284_vm11, %v246_v26, %v283_v55 }
  0xff   : > { %v293_v60 = vadd.f32 1e-16, %v281_v58  ;;  %v288_v61 = vsel %vm286_vm12, %v287_v57, %v285_v59 }
 0x100   : > { %v294_v62 = vadd.f32 1e-16, %v288_v61 }
 0x101   : > { %747 = vrcp.f32 %v293_v60 }
 0x102   : > { %749 = vrcp.f32 %v294_v62 }
 0x103   : > { %v740_v63 = vpop.eup %739 }
 0x104   : > { %v742_v3 = vpop.eup %741  ;;  %v300_v9 = vmul.f32 %v740_v63, %v1099_v0 }
 0x105   : > { %v296_v11 = vmul.f32 %v742_v3, %v1101_v1 }
 0x107   : > { %v744_v4 = vpop.eup %743 }
 0x108   : > { %v746_v8 = vpop.eup %745  ;;  %v302_v10 = vmul.f32 %v744_v4, %v1103_v2 }
 0x109   : > { %v298_v12 = vmul.f32 %v746_v8, %v1109_v5 }
 0x10a   : > { %v308_v14 = vpack.c.bf16 %v302_v10, %v300_v9 }
 0x10b   : > { %v748_v15 = vpop.eup %747  ;;  %v307_v16 = vpack.c.bf16 %v298_v12, %v296_v11 }
 0x10c   : > { %v750_v17 = vpop.eup %749  ;;  %617 = vmatmul.mubr.bf16.vlgmr.msra.gmra.mrb[0].mxu1 %v308_v14  ;;  %v304_v18 = vmul.f32 %v748_v15, %v1111_v6 }
 0x10d   : > { %613 = vmatmul.mubr.bf16.vlgmr.msra.gmra.mrb[0].mxu0 %v307_v16  ;;  %620 = vmatprep.mubr.msk.bf16.mxu1 %vm906_vm0, %v905_v13  ;;  %v306_v0 = vmul.f32 %v750_v17, %v1113_v7 }
 0x10f   : > { %v309_v19 = vpack.c.bf16 %v306_v0, %v304_v18 }
 0x114   : > { %621 = vmatmul.mubr.bf16.gmra.mrb[4].mxu1 %v309_v19 }
 0x1df   : > { %v416_v2 = vpop.f32.mrb[0].mxu1 }
 0x1e0   : > { %v408_v1 = vpop.f32.mrb[0].mxu0  ;;  %433 = vst [vmem:[%s219_s21 + $0x10] sm:$0xff] %v416_v2  ;;  %v618_v5 = vpop.f32.mrb[1].mxu1 }
 0x1e1   : > { %431 = vst [vmem:[%s219_s21] sm:$0xff] %v408_v1  ;;  %v614_v20 = vpop.f32.mrb[1].mxu0  ;;  %v419_v21 = vpop.f32.mrb[2].mxu1 }
 0x1e2   : > { %v411_v22 = vpop.f32.mrb[2].mxu0  ;;  %434 = vst [vmem:[%s219_s21 + $0x18] sm:$0xff] %v419_v21  ;;  %v619_v13 = vpop.f32.mrb[3].mxu1 }
 0x1e3   : > { %432 = vst [vmem:[%s219_s21 + $0x8] sm:$0xff] %v411_v22  ;;  %v615_v6 = vpop.f32.mrb[3].mxu0 }
 0x1e7   : > { %v424_v7 = vpop.f32.mrb[4].mxu1 }
 0x1e8   : > { %435 = vst [vmem:[%s219_s21 + $0x20] sm:$0xff] %v424_v7  ;;  %v622_v23 = vpop.f32.mrb[5].mxu1 }
 0x1e9   : > { %v427_v24 = vpop.f32.mrb[6].mxu1 }
 0x1ea   : > { %436 = vst [vmem:[%s219_s21 + $0x28] sm:$0xff] %v427_v24  ;;  %v623_v25 = vpop.f32.mrb[7].mxu1 }
 0x1eb   : > { %824 = shalt.err (!%p821_p9)
}
 0x1ec   : > { %s825_s5 = scalar_lea.hbm %s1167_s7, 768  ;;  %s829_s30 = scalar_lea.hbm %s1218_s2, 1536 }
 0x1ed   : > { %p826_p1 = scmp.ne.s32.totalorder %s1167_s7, %s825_s5  ;;  %p830_p4 = scmp.lt.u32.totalorder %s1167_s7, %s1218_s2 }
 0x1ee   : > { %p831_p6 = scmp.lt.u32.totalorder %s829_s30, %s825_s5  ;;  %p833_p0 = scmp.lt.u32.totalorder %s825_s5, %s1167_s7 }
 0x1ef   : > { %p827_p5 = pnand %p826_p1, %p1229_p3 }
 0x1f0   : > { %p832_p8 = por %p831_p6, %p830_p4 }
 0x1f1   : > { %p828_p2 = pneg %p827_p5 }
 0x1f2   : > { %p834_p11 = por %p833_p0, %p832_p8 }
 0x1f4   : > { %p835_p13 = pnand %p834_p11, %p828_p2 }
 0x1f6   : > { %838 = shalt.err (!%p835_p13)
}
 0x1f7   : > { %s908_s15 = smov 128   ;;  %s909_s21 = smov 8  }
 0x1f8   : > { %648 = dma.vmem_to_hbm [thread:$0]  (%p1229_p3), %s1162_s19, 768, %s1167_s7, %s438_s8, %s908_s15, %s908_s15, %s909_s21  }
 0x1f9 PF: > { %s468_s26 = sand.u32 1, %s877_s9   ;;  %p1230_p7 = scmp.ne.s32.totalorder %s1224_s24, 0 }
 0x1fa   : > { %p1231_p10 = scmp.ge.s32.totalorder %s897_s14, 2  ;;  %s469_s3 = scalar_lea.sflag [#allocation4], %s468_s26 }
 0x1fc   : > { %p658_p12 = pnand %p1231_p10, %p1230_p7 }
 0x1fe   : > { %872 = dma.done.wait (!%p658_p12), %s469_s3, 768  }
 0x1ff   : > { %874 = vsyncadd (!%p658_p12), %s469_s3, 4294966528  ;;  %s21_s14 = sadd.s32 1, %s897_s14   ;;  %s1232_s9 = smov %s881_s10 }
 0x200   : > { %p18_p9 = scmp.ge.s32.totalorder %s21_s14, 4   ;;  %s1233_s10 = smov %s885_s11 }
 0x201   : > { %s1234_s11 = smov %s981_s23  ;;  %s1235_s12 = smov %s893_s13 }
 0x202   : > { %s1236_s13 = smov %s1238_s17  ;;  %20 = sbr.rel (!%p18_p9) target bundleno = 8 (0x8), region = 86 }
 0x209   :  { %474 = vsyncpa [#allocation3], 1 }
 0x20a   :  { %476 = vsyncpa [#allocation3 + $0x1], 1 }
 0x20b   :  { %477 = vsyncpa [#allocation6], 1 }
 0x20c   :  { %479 = vsyncpa [#allocation6 + $0x1], 1 }
 0x20d   :  { %480 = vsyncpa [#allocation4], 1 }
 0x20e   :  { %482 = vsyncpa [#allocation4 + $0x1], 1 }

</bundles_post_ra>
